<compile_context>
chip_gen: v6e
topology: v6e:2x2x1
jax: 0.10.0
libtpu: 0.0.40
codegen_flags: <defaults>
</compile_context>

<pallas_src>
import jax
import jax.numpy as jnp
from jax.experimental import pallas as pl
from jax.experimental.pallas import tpu as pltpu


def waveact_kernel(params_ref, x_ref, o_ref):
    # params_ref: SMEM f32[2] = [R, phi]; x/o: (block_rows, lanes) VMEM tiles.
    r = params_ref[0]
    phi = params_ref[1]
    xf = x_ref[...].astype(jnp.float32)            # compute in f32 (bf16-safe)
    o_ref[...] = (r * jnp.sin(xf + phi)).astype(o_ref.dtype)


def _pick_lanes(n, cap=1024):
    """Widest multiple of 128 (<= cap) that divides n, else None."""
    cap = min(cap, (n // 128) * 128)
    for lanes in range(cap, 127, -128):
        if n % lanes == 0:
            return lanes
    return None


def waveact(x, w1, w2, *, target_tile_bytes=4 << 20, donate_x=False):
    """Applies w1*sin(x) + w2*cos(x) elementwise (any shape; w1/w2 scalar-ish)."""
    orig_shape = x.shape
    dtype = x.dtype
    n = x.size
    if n == 0:
        return x

    # Robust to (1,)-shaped params (like nn.Parameter(torch.ones(1))) or 0-d.
    w1s = jnp.asarray(w1, jnp.float32).reshape(-1)[0]
    w2s = jnp.asarray(w2, jnp.float32).reshape(-1)[0]

    lanes = _pick_lanes(n)
    if lanes is None:
        # Rare odd-sized input (n not a multiple of 128): a single fused XLA
        # elementwise op is already 1 read + 1 write of HBM, which beats any
        # pad-copy + kernel + slice-copy dance (2-3x traffic).
        xf = x.astype(jnp.float32)
        return (w1s * jnp.sin(xf) + w2s * jnp.cos(xf)).astype(dtype)

    # One transcendental per element: w1*sin(x)+w2*cos(x) = R*sin(x+phi).
    # atan2(0,0) = 0 and R = 0 => output 0, which matches w1 = w2 = 0.
    r = jnp.sqrt(w1s * w1s + w2s * w2s)
    phi = jnp.arctan2(w2s, w1s)
    params = jnp.stack([r, phi])                   # f32[2] -> SMEM

    rows = n // lanes
    x2 = jnp.reshape(x, (rows, lanes))             # contiguous reshape: no copy

    # ~4 MiB tiles, sublane-aligned. Double-buffered in+out = 16 MiB, inside
    # the explicit 32 MiB scoped-VMEM limit below on v5e/v6e/v7x.
    bytes_per_row = lanes * jnp.dtype(dtype).itemsize
    block_rows = max(8, (target_tile_bytes // bytes_per_row) // 8 * 8)
    if rows >= 16:
        # Guarantee >= 2 grid steps so v7x's two TensorCores both get work.
        block_rows = min(block_rows, max(8, (rows // 2) // 8 * 8))
    if block_rows >= rows:
        block_rows = rows                          # full-extent block is legal

    grid = (pl.cdiv(rows, block_rows),)            # ragged last block is fine:
                                                   # masked writeback, no reduce

    out2 = pl.pallas_call(
        waveact_kernel,
        out_shape=jax.ShapeDtypeStruct((rows, lanes), dtype),
        grid=grid,
        in_specs=[
            pl.BlockSpec(memory_space=pltpu.MemorySpace.SMEM),     # [R, phi]
            pl.BlockSpec((block_rows, lanes), lambda i: (i, 0)),   # x tile
        ],
        out_specs=pl.BlockSpec((block_rows, lanes), lambda i: (i, 0)),
        compiler_params=pltpu.CompilerParams(
            dimension_semantics=("parallel",),
            vmem_limit_bytes=32 * 1024 * 1024,
        ),
        input_output_aliases={1: 0} if donate_x else {},
    )(params, x2)

    return out2.reshape(orig_shape)


if __name__ == "__main__":
    # Deterministic params matching nn.Parameter(torch.ones(1)).
    w1 = jnp.ones((1,), dtype=jnp.float32)
    w2 = jnp.ones((1,), dtype=jnp.float32)

    def ref_fn(x):
        xf = x.astype(jnp.float32)
        return (w1[0] * jnp.sin(xf) + w2[0] * jnp.cos(xf)).astype(x.dtype)

    # Cases: small NCHW, multi-step grid (>=2 steps), ragged last row-block
    # (bf16), and an odd size that takes the fused-XLA fallback path.
    cases = [
        ((2, 4, 16, 16), jnp.float32),   # n=2048  -> lanes=1024, 1 step
        ((2, 4, 64, 64), jnp.float32),   # n=32768 -> 2 grid steps
        ((3, 4, 40, 40), jnp.bfloat16),  # n=19200 -> lanes=768, ragged block
        ((3, 5, 7), jnp.float32),        # n=105   -> jnp fallback path
    ]
    for i, (shape, dt) in enumerate(cases):
        key = jax.random.PRNGKey(i) if i else jax.random.PRNGKey(0)
        x = jax.random.normal(key, shape, dtype=jnp.float32).astype(dt)
        out = jax.block_until_ready(waveact(x, w1, w2))
        assert out.shape == x.shape and out.dtype == x.dtype
        ref = ref_fn(x)
        # R*sin(x+phi) rounds slightly differently from w1*sin+w2*cos; allow a
        # few f32 ulps (and bf16 storage error for the bf16 case).
        tol = 1e-2 if dt == jnp.bfloat16 else 1e-5
        assert jnp.allclose(out.astype(jnp.float32), ref.astype(jnp.float32),
                            atol=tol, rtol=tol), shape

    print("KERNEL_OK")
</pallas_src>

<mosaic_0001>
module attributes {stable_mosaic.version = 11 : i64} {
  func.func @waveact_kernel(%arg0: i32, %arg1: memref<2xf32, #tpu.memory_space<smem>>, %arg2: memref<2x1024xf32, #tpu.memory_space<vmem>>, %arg3: memref<2x1024xf32, #tpu.memory_space<vmem>>) attributes {dimension_semantics = [#tpu.dimension_semantics<parallel>], iteration_bounds = array<i64: 1>, scalar_prefetch = 0 : i64, scratch_operands = 0 : i64, tpu.core_type = #tpu.core_type<tc>, window_params = [{transform_indices = @transform_0, window_bounds = array<i64: 2>}, {transform_indices = @transform_1, window_bounds = array<i64: 2, 1024>}, {transform_indices = @transform_2, window_bounds = array<i64: 2, 1024>}]} {
    %c0 = arith.constant 0 : index
    %0 = memref.load %arg1[%c0] : memref<2xf32, #tpu.memory_space<smem>>
    %c1 = arith.constant 1 : index
    %1 = memref.load %arg1[%c1] : memref<2xf32, #tpu.memory_space<smem>>
    %c0_0 = arith.constant 0 : index
    %c0_1 = arith.constant 0 : index
    %2 = vector.load %arg2[%c0_0, %c0_1] : memref<2x1024xf32, #tpu.memory_space<vmem>>, vector<2x1024xf32>
    %3 = vector.broadcast %1 : f32 to vector<2x1024xf32>
    %4 = arith.addf %2, %3 : vector<2x1024xf32>
    %5 = math.sin %4 : vector<2x1024xf32>
    %6 = vector.broadcast %0 : f32 to vector<2x1024xf32>
    %7 = arith.mulf %6, %5 : vector<2x1024xf32>
    %c0_2 = arith.constant 0 : index
    %c0_3 = arith.constant 0 : index
    %8 = vector.load %arg3[%c0_2, %c0_3] : memref<2x1024xf32, #tpu.memory_space<vmem>>, vector<2x1024xf32>
    tpu.vector_store %arg3[%c0_2, %c0_3], %7 {strides = array<i32>} : memref<2x1024xf32, #tpu.memory_space<vmem>>, vector<2x1024xf32>,
    return
  }
  func.func @transform_0(%arg0: i32) -> i32 {
    %c0_i32 = arith.constant 0 : i32
    %c0_i32_0 = arith.constant 0 : i32
    return %c0_i32 : i32
  }
  func.func @transform_1(%arg0: i32) -> (i32, i32) {
    %c0_i32 = arith.constant 0 : i32
    %c0_i32_0 = arith.constant 0 : i32
    return %arg0, %c0_i32 : i32, i32
  }
  func.func @transform_2(%arg0: i32) -> (i32, i32) {
    %c0_i32 = arith.constant 0 : i32
    %c0_i32_0 = arith.constant 0 : i32
    return %arg0, %c0_i32 : i32, i32
  }
}

</mosaic_0001>

<bundles_post_ra>
// kernel: tpu_custom_call.1
= control target key start
LH: loop header
LB: loop body
LE: loop exit
PB: predicated region body
PF: predicated region fallthrough
CT: control target
= control target key end

     0   :  { %7 = vsyncpa [#allocation5], 0  ;;  %s473_s0 = inlined_call_operand.hbm [shape: f32[2], index: 0, kind: input, shape index: {}]   ;;  %s474_s1 = inlined_call_operand.hbm [shape: f32[2,1024], index: 1, kind: input, shape index: {}]   ;;  %s475_s2 = inlined_call_operand.hbm [shape: f32[2,1024], index: 2, kind: output, shape index: {}]  }
   0x1   :  { %8 = vsyncpa [#allocation3], 0 }
   0x2   :  { %9 = vsyncpa [#allocation4], 0  ;;  %s359_s9 = smov [#allocation2]   ;;  %s360_s12 = smov [#allocation6]  }
   0x3   :  { %17 = dma.hbm_to_smem %s473_s0, 16, %s359_s9, [#allocation5]  }
   0x4   :  { %s24_s13 = sshll.u32 %s360_s12, 4  ;;  %s25_s13 = int_to_ptr.vmem [resolvable:$true] %s24_s13 }
   0x5   :  { %s321_s14 = scalar_lea.vmem %s25_s13, 256  ;;  %p326_p1 = scmp.lt.s32.totalorder %s25_s13, %s25_s13 }
   0x6   :  { %p322_p0 = scmp.ne.s32.totalorder %s25_s13, %s321_s14  ;;  %p327_p2 = scmp.lt.s32.totalorder %s321_s14, %s321_s14 }
   0x8   :  { %p328_p3 = por %p327_p2, %p326_p1 }
   0xa   :  { %p329_p4 = pnand %p328_p3, %p322_p0 }
   0xc   :  { %332 = shalt.err (!%p329_p4)
}
   0xd   :  { %27 = dma.hbm_to_vmem [thread:$0]  %s474_s1, 256, %s25_s13, [#allocation3]  }
   0xe   :  { %353 = dma.done.wait [#allocation5], 16  }
   0xf   :  { %354 = vsyncadd [#allocation5], 4294967280 }
  0x10   :  { %355 = dma.done.wait [#allocation3], 256  }
  0x11   :  { %356 = vsyncadd [#allocation3], 4294967040 }
  0x12   :  { %34 = sfence }
  0x13   :  { %s271_s0 = sld [smem:[#allocation2 + $0x1]]  ;;  %v37_v0 = vld [vmem:[#allocation6] sm:$0xff]  ;;  %v38_v1 = vld [vmem:[#allocation6 + $0x8] sm:$0xff]  ;;  %v361_v27 = vmov 683565275   ;;  %s367_s17 = smov [#allocation7]  }
  0x14   :  { %v362_v29 = vmov 2475754826   ;;  %v363_v31 = vmov 2131351028   ;;  %v364_v33 = vmov 2102212464  }
  0x15   :  { %v365_v35 = vmov 920167782   ;;  %v366_v43 = vmov 1326507024   ;;  %s465_s1 = sld [smem:[#allocation2]]  ;;  %s261_s18 = sshll.u32 %s367_s17, 4  ;;  %s262_s18 = int_to_ptr.vmem [resolvable:$true] %s261_s18 }
  0x16   :  { %s333_s19 = scalar_lea.vmem %s262_s18, 256  ;;  %p338_p6 = scmp.lt.s32.totalorder %s262_s18, %s262_s18 }
  0x17   :  { %p334_p5 = scmp.ne.s32.totalorder %s262_s18, %s333_s19  ;;  %p339_p7 = scmp.lt.s32.totalorder %s333_s19, %s333_s19 }
  0x19   :  { %v39_v2 = vstv %s271_s0  ;;  %p340_p8 = por %p339_p7, %p338_p6 }
  0x1a   :  { %v389_v3 = vadd.f32 %v39_v2, %v37_v0  ;;  %v391_v4 = vadd.f32 %v39_v2, %v38_v1 }
  0x1b   :  { %p341_p9 = pnand %p340_p8, %p334_p5 }
  0x1c   :  { %v42_v5 = vand.u32 2147483647, %v389_v3  ;;  %v45_v6 = vand.u32 2139095040, %v389_v3  ;;  %v146_v7 = vand.u32 2147483647, %v391_v4  ;;  %v149_v8 = vand.u32 2139095040, %v391_v4 }
  0x1d   :  { %vm44_vm14 = vcmp.lt.s32.totalorder %v389_v3, 0 }
  0x1e   :  { %v46_v9 = vshrl.u32 %v45_v6, 23  ;;  %v49_v10 = vand.u32 8388607, %v42_v5  ;;  %v150_v11 = vshrl.u32 %v149_v8, 23  ;;  %v153_v12 = vand.u32 8388607, %v146_v7 }
  0x1f   :  { %vm452_vm15 = vcmp.le.f32.partialorder %v42_v5, 0.7853982 }
  0x20   :  { %v272_v13 = vadd.s32 4294967169, %v46_v9  ;;  %v276_v14 = vadd.s32 4294967169, %v150_v11  ;;  %v50_v16 = vor.u32 8388608, %v49_v10  ;;  %v154_v17 = vor.u32 8388608, %v153_v12 }
  0x22   :  { %v52_v15 = vadd.s32 1, %v272_v13  ;;  %v156_v18 = vadd.s32 1, %v276_v14  ;;  %v401_v23 = vshll.u32 %v50_v16, 8  ;;  %v403_v25 = vshll.u32 %v154_v17, 8 }
  0x24   :  { %vm53_vm0 = vcmp.gt.s32.totalorder %v52_v15, 0  ;;  %vm157_vm1 = vcmp.gt.s32.totalorder %v156_v18, 0 }
  0x25   :  { %v54_v19 = vsel %vm53_vm0, %v52_v15, 0  ;;  %v158_v22 = vsel %vm157_vm1, %v156_v18, 0  ;;  %vm148_vm0 = vcmp.lt.s32.totalorder %v391_v4, 0  ;;  %vm147_vm1 = vcmp.le.f32.partialorder %v146_v7, 0.7853982 }
  0x26   :  { %v55_v20 = vshrl.u32 %v54_v19, 5  ;;  %v56_v21 = vand.u32 31, %v54_v19  ;;  %v160_v24 = vand.u32 31, %v158_v22  ;;  %v405_v37 = vshrl.u32 %v158_v22, 5 }
  0x28   :  { %v57_v26 = vsub.s32 32, %v56_v21  ;;  %v59_v28 = vshll.u32 %v361_v27, %v56_v21  ;;  %v62_v30 = vshll.u32 %v362_v29, %v56_v21  ;;  %v65_v32 = vshll.u32 %v363_v31, %v56_v21 }
  0x29   :  { %v68_v34 = vshll.u32 %v364_v33, %v56_v21  ;;  %v71_v36 = vshll.u32 %v365_v35, %v56_v21  ;;  %vm74_vm2 = vcmp.lt.s32.totalorder %v55_v20, 1  ;;  %vm75_vm3 = vcmp.lt.s32.totalorder %v55_v20, 2 }
  0x2a   :  { %v58_v38 = vshrl.u32 %v361_v27, %v57_v26  ;;  %v60_v39 = vshrl.u32 %v362_v29, %v57_v26  ;;  %v63_v40 = vshrl.u32 %v363_v31, %v57_v26  ;;  %v66_v41 = vshrl.u32 %v364_v33, %v57_v26 }
  0x2b   :  { %v69_v42 = vshrl.u32 %v365_v35, %v57_v26  ;;  %v72_v44 = vshrl.u32 %v366_v43, %v57_v26  ;;  %vm77_vm4 = vcmp.lt.s32.totalorder %v55_v20, 4  ;;  %v161_v48 = vsub.s32 32, %v160_v24 }
  0x2c   :  { %v61_v45 = vor.u32 %v60_v39, %v59_v28  ;;  %v64_v46 = vor.u32 %v63_v40, %v62_v30  ;;  %v67_v47 = vor.u32 %v66_v41, %v65_v32  ;;  %vm76_vm5 = vcmp.lt.s32.totalorder %v55_v20, 3 }
  0x2d   :  { %v70_v49 = vor.u32 %v69_v42, %v68_v34  ;;  %v73_v50 = vor.u32 %v72_v44, %v71_v36  ;;  %v163_v51 = vshll.u32 %v361_v27, %v160_v24  ;;  %v166_v59 = vshll.u32 %v362_v29, %v160_v24 }
  0x2e   :  { %v78_v52 = vsel %vm74_vm2, %v58_v38, %v61_v45  ;;  %v79_v53 = vsel %vm77_vm4, %v67_v47, 2102212464  ;;  %v82_v54 = vsel %vm74_vm2, %v61_v45, %v64_v46  ;;  %v86_v55 = vsel %vm74_vm2, %v64_v46, %v67_v47 }
  0x2f   :  { %v80_v56 = vsel %vm76_vm5, %v64_v46, %v79_v53  ;;  %v83_v57 = vsel %vm77_vm4, %v70_v49, 920167782  ;;  %v87_v58 = vsel %vm77_vm4, %v73_v50, 1326507024  ;;  %v162_v62 = vshrl.u32 %v361_v27, %v161_v48 }
  0x30   :  { %v84_v60 = vsel %vm76_vm5, %v67_v47, %v83_v57  ;;  %v88_v61 = vsel %vm76_vm5, %v70_v49, %v87_v58  ;;  %v164_v63 = vshrl.u32 %v362_v29, %v161_v48  ;;  %v81_v0 = vsel %vm75_vm3, %v78_v52, %v80_v56 }
  0x31   :  { %v85_v1 = vsel %vm75_vm3, %v82_v54, %v84_v60  ;;  %v89_v2 = vsel %vm75_vm3, %v86_v55, %v88_v61  ;;  %v167_v6 = vshrl.u32 %v363_v31, %v161_v48  ;;  %v169_v14 = vshll.u32 %v363_v31, %v160_v24 }
  0x32   :  { %v414_v8 = vmul.u32.u64.low %v401_v23, %v89_v2  ;;  %v415_v9 = vmul.u32.u64.high %v401_v23, %v89_v2, %v414_v8  ;;  %v418_v10 = vmul.u32.u64.low %v401_v23, %v85_v1  ;;  %v419_v11 = vmul.u32.u64.high %v401_v23, %v85_v1, %v418_v10 }
  0x33   :  { %v165_v12 = vor.u32 %v164_v63, %v163_v51  ;;  %v168_v13 = vor.u32 %v167_v6, %v166_v59  ;;  %v170_v15 = vshrl.u32 %v364_v33, %v161_v48  ;;  %v172_v16 = vshll.u32 %v364_v33, %v160_v24 }
  0x34   :  { %v173_v17 = vshrl.u32 %v365_v35, %v161_v48  ;;  %v175_v18 = vshll.u32 %v365_v35, %v160_v24  ;;  %v176_v19 = vshrl.u32 %v366_v43, %v161_v48  ;;  %v97_v20 = vmul.u32 %v401_v23, %v81_v0 }
  0x35   :  { %v171_v21 = vor.u32 %v170_v15, %v169_v14  ;;  %vm178_vm6 = vcmp.lt.s32.totalorder %v405_v37, 1  ;;  %vm179_vm7 = vcmp.lt.s32.totalorder %v405_v37, 2  ;;  %vm99_vm8 = vc.u32 %v415_v9, %v418_v10 }
  0x36   :  { %v100_v22 = vadd.s32 1, %v419_v11  ;;  %v174_v26 = vor.u32 %v173_v17, %v172_v16  ;;  %vm180_vm9 = vcmp.lt.s32.totalorder %v405_v37, 3  ;;  %v177_v27 = vor.u32 %v176_v19, %v175_v18 }
  0x37   :  { %vm181_vm10 = vcmp.lt.s32.totalorder %v405_v37, 4  ;;  %v182_v28 = vsel %vm178_vm6, %v162_v62, %v165_v12  ;;  %v186_v24 = vsel %vm178_vm6, %v165_v12, %v168_v13  ;;  %v190_v31 = vsel %vm178_vm6, %v168_v13, %v171_v21 }
  0x38   :  { %v101_v29 = vsel %vm99_vm8, %v100_v22, %v419_v11  ;;  %v183_v23 = vsel %vm181_vm10, %v171_v21, 2102212464  ;;  %v187_v30 = vsel %vm181_vm10, %v174_v26, 920167782  ;;  %v191_v35 = vsel %vm181_vm10, %v177_v27, 1326507024 }
  0x39   :  { %v102_v32 = vadd.s32 %v101_v29, %v97_v20  ;;  %v184_v33 = vsel %vm180_vm9, %v168_v13, %v183_v23  ;;  %v188_v34 = vsel %vm180_vm9, %v171_v21, %v187_v30  ;;  %v192_v39 = vsel %vm180_vm9, %v174_v26, %v191_v35 }
  0x3a   :  { %v185_v36 = vsel %vm179_vm7, %v182_v28, %v184_v33  ;;  %v189_v38 = vsel %vm179_vm7, %v186_v24, %v188_v34  ;;  %v193_v41 = vsel %vm179_vm7, %v190_v31, %v192_v39  ;;  %v98_v60 = vadd.s32 %v418_v10, %v415_v9 }
  0x3b   :  { %v103_v40 = vadd.s32 536870912, %v102_v32  ;;  %v436_v42 = vmul.u32.u64.low %v403_v25, %v189_v38  ;;  %v437_v43 = vmul.u32.u64.high %v403_v25, %v189_v38, %v436_v42  ;;  %v201_v47 = vmul.u32 %v403_v25, %v185_v36 }
  0x3c   :  { %v440_v44 = vmul.u32.u64.low %v403_v25, %v193_v41  ;;  %v441_v45 = vmul.u32.u64.high %v403_v25, %v193_v41, %v440_v44  ;;  %vm134_vm5 = vweird.f32 %v389_v3  ;;  %vm238_vm9 = vweird.f32 %v391_v4 }
  0x3d   :  { %v104_v46 = vshrl.u32 %v103_v40, 30  ;;  %v204_v49 = vadd.s32 1, %v437_v43 }
  0x3e   :  { %vm203_vm11 = vc.u32 %v441_v45, %v436_v42  ;;  %v202_v16 = vadd.s32 %v436_v42, %v441_v45 }
  0x3f   :  { %v105_v48 = vshll.u32 %v104_v46, 30  ;;  %v205_v37 = vsel %vm203_vm11, %v204_v49, %v437_v43  ;;  %v128_v21 = vsub.s32 4, %v104_v46 }
  0x40   :  { %v206_v51 = vadd.s32 %v205_v37, %v201_v47  ;;  %v250_v37 = vstv %s465_s1 }
  0x41   :  { %v106_v50 = vsub.s32 %v102_v32, %v105_v48  ;;  %v129_v30 = vsel %vm44_vm14, %v128_v21, %v104_v46 }
  0x42   :  { %v207_v53 = vadd.s32 536870912, %v206_v51  ;;  %v131_v5 = vsel %vm452_vm15, 0, %v129_v30 }
  0x43   :  { %v108_v52 = vsub.s32 0, %v106_v50  ;;  %v135_v38 = vadd.s32 3, %v131_v5 }
  0x44   :  { %v208_v55 = vshrl.u32 %v207_v53, 30 }
  0x45   :  { %v273_v54 = vmin.u32 %v108_v52, %v106_v50  ;;  %v136_v43 = vand.u32 3, %v135_v38 }
  0x46   :  { %v209_v57 = vshll.u32 %v208_v55, 30  ;;  %v232_v36 = vsub.s32 4, %v208_v55 }
  0x47   :  { %v110_v56 = vclz %v273_v54  ;;  %vm141_vm2 = vcmp.eq.s32.totalorder %v136_v43, 2  ;;  %vm138_vm3 = vcmp.eq.s32.totalorder %v136_v43, 0  ;;  %vm137_vm4 = vcmp.lt.s32.totalorder %v136_v43, 2 }
  0x48   :  { %v210_v59 = vsub.s32 %v206_v51, %v209_v57  ;;  %v233_v41 = vsel %vm148_vm0, %v232_v36, %v208_v55 }
  0x49   :  { %v274_v58 = vadd.s32 4294967294, %v110_v56  ;;  %v235_v44 = vsel %vm147_vm1, 0, %v233_v41 }
  0x4a   :  { %v212_v61 = vsub.s32 0, %v210_v59  ;;  %v239_v48 = vadd.s32 3, %v235_v44 }
  0x4b   :  { %vm275_vm12 = vcmp.lt.s32.totalorder %v274_v58, 0 }
  0x4c   :  { %v113_v25 = vsel %vm275_vm12, 0, %v274_v58  ;;  %v277_v1 = vmin.u32 %v212_v61, %v210_v59  ;;  %v240_v52 = vand.u32 3, %v239_v48 }
  0x4d   :  { %v114_v62 = vsub.s32 32, %v113_v25  ;;  %v115_v63 = vshll.u32 %v106_v50, %v113_v25  ;;  %v118_v0 = vsub.s32 4294967266, %v113_v25 }
  0x4e   :  { %v214_v8 = vclz %v277_v1  ;;  %vm245_vm6 = vcmp.eq.s32.totalorder %v240_v52, 2  ;;  %vm242_vm7 = vcmp.eq.s32.totalorder %v240_v52, 0  ;;  %vm241_vm8 = vcmp.lt.s32.totalorder %v240_v52, 2 }
  0x4f   :  { %v116_v2 = vshrl.u32 %v98_v60, %v114_v62  ;;  %v119_v6 = vadd.s32 127, %v118_v0 }
  0x50   :  { %v278_v13 = vadd.s32 4294967294, %v214_v8 }
  0x51   :  { %v117_v11 = vor.u32 %v116_v2, %v115_v63  ;;  %v120_v12 = vshll.u32 %v119_v6, 23 }
  0x52   :  { %vm279_vm13 = vcmp.lt.s32.totalorder %v278_v13, 0 }
  0x53   :  { %v121_v14 = vor.u32 4788187, %v120_v12  ;;  %v124_v15 = vcvt.s32.f32 %v117_v11  ;;  %v217_v9 = vsel %vm279_vm13, 0, %v278_v13 }
  0x54   :  { %v218_v10 = vsub.s32 32, %v217_v9  ;;  %v219_v18 = vshll.u32 %v210_v59, %v217_v9  ;;  %v222_v19 = vsub.s32 4294967266, %v217_v9 }
  0x55   :  { %v122_v17 = vand.u32 2147483647, %v121_v14 }
  0x56   :  { %v220_v22 = vshrl.u32 %v202_v16, %v218_v10  ;;  %v223_v26 = vadd.s32 127, %v222_v19 }
  0x57   :  { %v125_v20 = vmul.f32 %v124_v15, %v122_v17 }
  0x58   :  { %v221_v24 = vor.u32 %v220_v22, %v219_v18  ;;  %v224_v29 = vshll.u32 %v223_v26, 23 }
  0x59   :  { %v126_v28 = vxor.u32 2147483648, %v125_v20 }
  0x5a   :  { %v225_v32 = vor.u32 4788187, %v224_v29  ;;  %v228_v33 = vcvt.s32.f32 %v221_v24 }
  0x5b   :  { %v127_v23 = vsel %vm44_vm14, %v126_v28, %v125_v20 }
  0x5c   :  { %v130_v31 = vsel %vm452_vm15, %v389_v3, %v127_v23  ;;  %v226_v34 = vand.u32 2147483647, %v225_v32 }
  0x5d   :  { %297 = vcosq.f32 %v130_v31 }
  0x5e   :  { %299 = vsinq.f32 %v130_v31  ;;  %v229_v35 = vmul.f32 %v228_v33, %v226_v34 }
  0x60   :  { %v230_v39 = vxor.u32 2147483648, %v229_v35 }
  0x62   :  { %v231_v40 = vsel %vm148_vm0, %v230_v39, %v229_v35 }
  0x63   :  { %v234_v42 = vsel %vm147_vm1, %v391_v4, %v231_v40 }
  0x64   :  { %301 = vcosq.f32 %v234_v42 }
  0x65   :  { %303 = vsinq.f32 %v234_v42 }
  0x6a   :  { %v298_v45 = vpop.eup %297 }
  0x6b   :  { %v300_v46 = vpop.eup %299  ;;  %v142_v47 = vxor.u32 2147483648, %v298_v45 }
  0x6c   :  { %v139_v7 = vxor.u32 2147483648, %v300_v46 }
  0x6d   :  { %v143_v49 = vsel %vm141_vm2, %v142_v47, %v300_v46 }
  0x6e   :  { %v140_v50 = vsel %vm138_vm3, %v298_v45, %v139_v7 }
  0x6f   :  { %v144_v51 = vsel %vm137_vm4, %v140_v50, %v143_v49 }
  0x70   :  { %v145_v53 = vsel %vm134_vm5, nan, %v144_v51 }
  0x71   :  { %v251_v54 = vmul.f32 %v250_v37, %v145_v53  ;;  %v302_v55 = vpop.eup %301 }
  0x72   :  { %v304_v56 = vpop.eup %303  ;;  %v246_v57 = vxor.u32 2147483648, %v302_v55 }
  0x73   :  { %253 = vst [vmem:[#allocation7] sm:$0xff] %v251_v54  ;;  %v243_v58 = vxor.u32 2147483648, %v304_v56 }
  0x74   :  { %v247_v59 = vsel %vm245_vm6, %v246_v57, %v304_v56 }
  0x75   :  { %v244_v60 = vsel %vm242_vm7, %v302_v55, %v243_v58 }
  0x76   :  { %v248_v3 = vsel %vm241_vm8, %v244_v60, %v247_v59 }
  0x77   :  { %v249_v25 = vsel %vm238_vm9, nan, %v248_v3 }
  0x78   :  { %v252_v61 = vmul.f32 %v250_v37, %v249_v25 }
  0x7a   :  { %254 = vst [vmem:[#allocation7 + $0x8] sm:$0xff] %v252_v61 }
  0x7b   :  { %344 = shalt.err (!%p341_p9)
}
  0x7c   :  { %264 = dma.vmem_to_hbm [thread:$0]  %s262_s18, 256, %s475_s2, [#allocation4]  }
  0x7d   :  { %357 = dma.done.wait [#allocation4], 256  }
  0x7e   :  { %358 = vsyncadd [#allocation4], 4294967040 }
  0x7f   :  { %268 = vsyncpa [#allocation3], 1 }
  0x80   :  { %269 = vsyncpa [#allocation4], 1 }
  0x81   :  { %270 = vsyncpa [#allocation5], 1 }

</bundles_post_ra>
